<compile_context>
chip_gen: v6e
topology: v6e:2x2x1
jax: 0.10.0
libtpu: 0.0.40
codegen_flags: <defaults>
</compile_context>

<pallas_src>
import math

import numpy as np
import jax
import jax.numpy as jnp
from jax.experimental import pallas as pl

# ---- model hyperparameters (small, consistent with the module) ----
B = 2            # batch
S = 8            # seq_len
D = 32           # d_model
H = 4            # num_heads
DK = D // H      # head dim
DFF = 64         # feed-forward dim
EPS = 1e-5       # nn.LayerNorm default eps

BS = B * S       # 16: rows of the flattened activation slab
BHS = B * H * S  # 64: rows of the head-block-expanded K/V layout
NEG = -1e30      # additive bias that kills cross-batch score entries


def encoder_layer_kernel(x_ref, w_ref, c_ref, b_ref, o_ref):
    x = x_ref[...]                                        # (BS, D)

    # ---- static, aligned sub-views of the packed slabs (loads of sub-windows) ----
    wqkv = w_ref[0 * D:1 * D, :]                          # (D, 3D)
    wo = w_ref[1 * D:2 * D, 0:D]                          # (D, D)
    w1 = w_ref[2 * D:3 * D, 0:DFF]                        # (D, DFF)

    r_mat = c_ref[0:BHS, 0:BS]                            # (BHS, BS) replication matrix
    mv = c_ref[BHS:2 * BHS, 0:D]                          # (BHS, D)  head-block mask
    neg_b = c_ref[2 * BHS:2 * BHS + BS, 0:BHS]            # (BS, BHS) cross-batch -1e30 bias
    w2 = c_ref[2 * BHS + BS:2 * BHS + BS + DFF, 0:D]      # (DFF, D)

    bqkv = b_ref[0:1, 0:3 * D]                            # (1, 3D)
    b1 = b_ref[1:2, 0:DFF]
    bo = b_ref[2:3, 0:D]
    b2 = b_ref[3:4, 0:D]
    g1 = b_ref[4:5, 0:D]
    be1 = b_ref[5:6, 0:D]
    g2 = b_ref[6:7, 0:D]
    be2 = b_ref[7:8, 0:D]

    # ---- fused Q/K/V projection: one (BS, D) x (D, 3D) MXU pass ----
    qkv = jnp.dot(x, wqkv, preferred_element_type=jnp.float32) + bqkv
    q = qkv[:, 0 * D:1 * D] * (1.0 / math.sqrt(DK))       # score scale folded into q
    k = qkv[:, 1 * D:2 * D]
    v = qkv[:, 2 * D:3 * D]

    # ---- multi-head attention for ALL batches & heads at once ----
    # Head-block-diagonal K/V: row r = b*H*S + h*S + t holds K/V[b*S + t, :] masked to head h.
    kexp = jnp.dot(r_mat, k, preferred_element_type=jnp.float32) * mv   # (BHS, D)
    vexp = jnp.dot(r_mat, v, preferred_element_type=jnp.float32) * mv   # (BHS, D)

    # NT matmul: contract last dims of both operands, no transpose materialized.
    s = jax.lax.dot_general(q, kexp, (((1,), (1,)), ((), ())),
                            preferred_element_type=jnp.float32)         # (BS, BHS)
    s = s + neg_b                                         # cross-batch entries -> ~-1e30

    # Softmax per head group; the shared per-row max is an exact stabilizer because every
    # head group is renormalized by its own denominator z below.
    m = jnp.max(s, axis=-1, keepdims=True)
    p = jnp.exp(s - m)                                    # (BS, BHS); cross-batch -> exactly 0

    # Per-head denominators broadcast straight into the concatenated-head feature layout.
    z = jnp.dot(p, mv, preferred_element_type=jnp.float32)              # (BS, D)
    ctx = jnp.dot(p, vexp, preferred_element_type=jnp.float32) / z      # (BS, D)

    attn_out = jnp.dot(ctx, wo, preferred_element_type=jnp.float32) + bo

    # ---- residual + LayerNorm 1 (rsqrt on the EUP) ----
    h1 = x + attn_out
    mu1 = jnp.mean(h1, axis=-1, keepdims=True)
    c1 = h1 - mu1
    var1 = jnp.mean(c1 * c1, axis=-1, keepdims=True)
    h1n = c1 * jax.lax.rsqrt(var1 + EPS) * g1 + be1

    # ---- position-wise feed-forward: linear1 -> exact-erf GELU -> linear2 ----
    f = jnp.dot(h1n, w1, preferred_element_type=jnp.float32) + b1
    f = 0.5 * f * (1.0 + jax.lax.erf(f * (1.0 / math.sqrt(2.0))))
    f = jnp.dot(f, w2, preferred_element_type=jnp.float32) + b2

    # ---- residual + LayerNorm 2 ----
    h2 = h1n + f
    mu2 = jnp.mean(h2, axis=-1, keepdims=True)
    c2 = h2 - mu2
    var2 = jnp.mean(c2 * c2, axis=-1, keepdims=True)
    out = c2 * jax.lax.rsqrt(var2 + EPS) * g2 + be2

    o_ref[...] = out.astype(o_ref.dtype)


def _attention_constants():
    """Constant operands for the batched head-block attention formulation (built once)."""
    rows = np.arange(BHS)
    # Replication matrix: row r = b*H*S + h*S + t picks activation row b*S + t.
    r = np.zeros((BHS, BS), np.float32)
    r[rows, (rows // (H * S)) * S + (rows % S)] = 1.0
    # Head-block mask: feature d belongs to head d // DK; row r belongs to head (r // S) % H.
    head_of_row = (rows // S) % H
    head_of_col = np.arange(D) // DK
    mv = (head_of_row[:, None] == head_of_col[None, :]).astype(np.float32)   # (BHS, D)
    # Cross-batch additive bias (0 where query batch == key batch, -1e30 elsewhere).
    same_batch = (np.arange(BS)[:, None] // S) == (rows[None, :] // (H * S))
    neg_b = np.where(same_batch, 0.0, NEG).astype(np.float32)                # (BS, BHS)
    return r, mv, neg_b


def transformer_encoder_layer(x, p):
    """x: [B, S, D] float32.  p: dict of unfused weights (see init_params)."""
    b, s, d = x.shape
    assert (b, s, d) == (B, S, D)

    # ---- wrapper-side packing (one-time layout plumbing, not per-step work) ----
    # Weight slab (3D, 3D): rows [0,D)=Wqkv, [D,2D)=Wo (lanes 0:D), [2D,3D)=W1 (lanes 0:DFF).
    wqkv = jnp.concatenate([p["wq"], p["wk"], p["wv"]], axis=1)              # (D, 3D)
    w_slab = jnp.concatenate([
        wqkv,
        jnp.pad(p["wo"], ((0, 0), (0, 3 * D - D))),
        jnp.pad(p["w1"], ((0, 0), (0, 3 * D - DFF))),
    ], axis=0)                                                               # (96, 96)

    # Constant + W2 slab (2*BHS + BS + DFF, BHS) = (208, 64).
    r_mat, mv, neg_b = _attention_constants()
    c_slab = jnp.concatenate([
        jnp.pad(jnp.asarray(r_mat), ((0, 0), (0, BHS - BS))),
        jnp.pad(jnp.asarray(mv), ((0, 0), (0, BHS - D))),
        jnp.asarray(neg_b),
        jnp.pad(p["w2"], ((0, 0), (0, BHS - D))),
    ], axis=0)

    # Bias / LayerNorm slab (8, 3D): row 0 = bqkv, 1 = b1, 2..7 = bo, b2, g1, be1, g2, be2.
    bqkv = jnp.concatenate([p["bq"], p["bk"], p["bv"]])                      # (3D,)
    small = jnp.stack([
        jnp.pad(p["b1"], (0, 3 * D - DFF)),
        jnp.pad(p["bo"], (0, 3 * D - D)),
        jnp.pad(p["b2"], (0, 3 * D - D)),
        jnp.pad(p["g1"], (0, 3 * D - D)),
        jnp.pad(p["be1"], (0, 3 * D - D)),
        jnp.pad(p["g2"], (0, 3 * D - D)),
        jnp.pad(p["be2"], (0, 3 * D - D)),
    ])
    b_slab = jnp.concatenate([bqkv[None, :], small], axis=0)                 # (8, 3D)

    x2 = x.reshape(b * s, d)                                                 # (BS, D)

    out2 = pl.pallas_call(
        encoder_layer_kernel,
        out_shape=jax.ShapeDtypeStruct((b * s, d), x.dtype),
        # No grid: single invocation, all 4 operands (~90 KB) resident in VMEM -- far under
        # even v5e's 16 MiB default scoped limit.  See header notes for the v7x grid /
        # vmem_limit_bytes changes needed when scaling beyond toy dimensions.
    )(x2, w_slab, c_slab, b_slab)
    return out2.reshape(b, s, d)


def init_params(key):
    """Deterministic init. Linear weights stored as [in, out]; biases/LN params as 1-D."""
    keys = jax.random.split(key, 12)
    scale = 0.02

    def lin(kw, kb, din, dout):
        w = scale * jax.random.normal(kw, (din, dout), jnp.float32)
        bvec = scale * jax.random.normal(kb, (dout,), jnp.float32)
        return w, bvec

    wq, bq = lin(keys[0], keys[1], D, D)
    wk, bk = lin(keys[2], keys[3], D, D)
    wv, bv = lin(keys[4], keys[5], D, D)
    wo, bo = lin(keys[6], keys[7], D, D)
    w1, b1 = lin(keys[8], keys[9], D, DFF)
    w2, b2 = lin(keys[10], keys[11], DFF, D)
    g1 = jnp.ones((D,), jnp.float32)
    be1 = jnp.zeros((D,), jnp.float32)
    g2 = jnp.ones((D,), jnp.float32)
    be2 = jnp.zeros((D,), jnp.float32)
    return dict(wq=wq, bq=bq, wk=wk, bk=bk, wv=wv, bv=bv, wo=wo, bo=bo,
                w1=w1, b1=b1, w2=w2, b2=b2, g1=g1, be1=be1, g2=g2, be2=be2)


def reference_forward(x, p):
    """Pure-JAX reference matching the PyTorch module (eval mode, mask=None)."""
    q = x @ p["wq"] + p["bq"]
    k = x @ p["wk"] + p["bk"]
    v = x @ p["wv"] + p["bv"]

    def split(t):  # [B,S,D] -> [B,H,S,DK]
        return t.reshape(B, S, H, DK).transpose(0, 2, 1, 3)

    qh, kh, vh = split(q), split(k), split(v)
    scores = jnp.einsum("bhqd,bhkd->bhqk", qh, kh) / math.sqrt(DK)
    attn = jax.nn.softmax(scores, axis=-1)
    ctx = jnp.einsum("bhqk,bhkd->bhqd", attn, vh)
    ctx = ctx.transpose(0, 2, 1, 3).reshape(B, S, D)
    attn_out = ctx @ p["wo"] + p["bo"]

    def ln(t, g, bvec):
        mu = jnp.mean(t, -1, keepdims=True)
        var = jnp.mean((t - mu) ** 2, -1, keepdims=True)
        return (t - mu) / jnp.sqrt(var + EPS) * g + bvec

    h1 = ln(x + attn_out, p["g1"], p["be1"])
    f = h1 @ p["w1"] + p["b1"]
    f = 0.5 * f * (1.0 + jax.lax.erf(f / math.sqrt(2.0)))
    f = f @ p["w2"] + p["b2"]
    return ln(h1 + f, p["g2"], p["be2"])


if __name__ == "__main__":
    key = jax.random.PRNGKey(0)
    kx, kp = jax.random.split(key)
    x = jax.random.normal(kx, (B, S, D), jnp.float32)
    params = init_params(kp)

    out = transformer_encoder_layer(x, params)
    out = jax.block_until_ready(out)

    ref = reference_forward(x, params)
    assert out.shape == (B, S, D)
    assert jnp.allclose(out, ref, atol=2e-4, rtol=2e-4), "mismatch vs reference"

    print("KERNEL_OK")
</pallas_src>

<mosaic_0001>
module attributes {stable_mosaic.version = 11 : i64} {
  func.func @encoder_layer_kernel(%arg0: memref<16x32xf32, #tpu.memory_space<vmem>>, %arg1: memref<96x96xf32, #tpu.memory_space<vmem>>, %arg2: memref<208x64xf32, #tpu.memory_space<vmem>>, %arg3: memref<8x96xf32, #tpu.memory_space<vmem>>, %arg4: memref<16x32xf32, #tpu.memory_space<vmem>>) attributes {dimension_semantics = [], scalar_prefetch = 0 : i64, scratch_operands = 0 : i64, tpu.core_type = #tpu.core_type<tc>} {
    %c0 = arith.constant 0 : index
    %c0_0 = arith.constant 0 : index
    %0 = vector.load %arg0[%c0, %c0_0] : memref<16x32xf32, #tpu.memory_space<vmem>>, vector<16x32xf32>
    %c0_1 = arith.constant 0 : index
    %c0_2 = arith.constant 0 : index
    %1 = vector.load %arg1[%c0_1, %c0_2] : memref<96x96xf32, #tpu.memory_space<vmem>>, vector<32x96xf32>
    %c32 = arith.constant 32 : index
    %c0_3 = arith.constant 0 : index
    %2 = vector.load %arg1[%c32, %c0_3] : memref<96x96xf32, #tpu.memory_space<vmem>>, vector<32x32xf32>
    %c64 = arith.constant 64 : index
    %c0_4 = arith.constant 0 : index
    %3 = vector.load %arg1[%c64, %c0_4] : memref<96x96xf32, #tpu.memory_space<vmem>>, vector<32x64xf32>
    %c0_5 = arith.constant 0 : index
    %c0_6 = arith.constant 0 : index
    %4 = vector.load %arg2[%c0_5, %c0_6] : memref<208x64xf32, #tpu.memory_space<vmem>>, vector<64x16xf32>
    %c64_7 = arith.constant 64 : index
    %c0_8 = arith.constant 0 : index
    %5 = vector.load %arg2[%c64_7, %c0_8] : memref<208x64xf32, #tpu.memory_space<vmem>>, vector<64x32xf32>
    %c128 = arith.constant 128 : index
    %c0_9 = arith.constant 0 : index
    %6 = vector.load %arg2[%c128, %c0_9] : memref<208x64xf32, #tpu.memory_space<vmem>>, vector<16x64xf32>
    %c144 = arith.constant 144 : index
    %c0_10 = arith.constant 0 : index
    %7 = vector.load %arg2[%c144, %c0_10] : memref<208x64xf32, #tpu.memory_space<vmem>>, vector<64x32xf32>
    %c0_11 = arith.constant 0 : index
    %c0_12 = arith.constant 0 : index
    %8 = vector.load %arg3[%c0_11, %c0_12] : memref<8x96xf32, #tpu.memory_space<vmem>>, vector<1x96xf32>
    %c1 = arith.constant 1 : index
    %c0_13 = arith.constant 0 : index
    %9 = vector.load %arg3[%c1, %c0_13] : memref<8x96xf32, #tpu.memory_space<vmem>>, vector<1x64xf32>
    %c2 = arith.constant 2 : index
    %c0_14 = arith.constant 0 : index
    %10 = vector.load %arg3[%c2, %c0_14] : memref<8x96xf32, #tpu.memory_space<vmem>>, vector<1x32xf32>
    %c3 = arith.constant 3 : index
    %c0_15 = arith.constant 0 : index
    %11 = vector.load %arg3[%c3, %c0_15] : memref<8x96xf32, #tpu.memory_space<vmem>>, vector<1x32xf32>
    %c4 = arith.constant 4 : index
    %c0_16 = arith.constant 0 : index
    %12 = vector.load %arg3[%c4, %c0_16] : memref<8x96xf32, #tpu.memory_space<vmem>>, vector<1x32xf32>
    %c5 = arith.constant 5 : index
    %c0_17 = arith.constant 0 : index
    %13 = vector.load %arg3[%c5, %c0_17] : memref<8x96xf32, #tpu.memory_space<vmem>>, vector<1x32xf32>
    %c6 = arith.constant 6 : index
    %c0_18 = arith.constant 0 : index
    %14 = vector.load %arg3[%c6, %c0_18] : memref<8x96xf32, #tpu.memory_space<vmem>>, vector<1x32xf32>
    %c7 = arith.constant 7 : index
    %c0_19 = arith.constant 0 : index
    %15 = vector.load %arg3[%c7, %c0_19] : memref<8x96xf32, #tpu.memory_space<vmem>>, vector<1x32xf32>
    %cst = arith.constant dense<0.000000e+00> : vector<16x96xf32>
    %16 = tpu.matmul %0, %1, %cst {dimension_numbers = #tpu.dot_dimension_numbers<[1], [0], [0], [1], [0, 0, 1, 1], [], []>} : vector<16x32xf32>, vector<32x96xf32>, vector<16x96xf32> -> vector<16x96xf32>
    %17 = vector.broadcast %8 : vector<1x96xf32> to vector<16x96xf32>
    %18 = arith.addf %16, %17 : vector<16x96xf32>
    %19 = vector.extract_strided_slice %18 {offsets = [0, 0], sizes = [16, 32], strides = [1, 1]} : vector<16x96xf32> to vector<16x32xf32>
    %cst_20 = arith.constant 0.353553385 : f32
    %20 = vector.broadcast %cst_20 : f32 to vector<16x32xf32>
    %21 = arith.mulf %19, %20 : vector<16x32xf32>
    %22 = vector.extract_strided_slice %18 {offsets = [0, 32], sizes = [16, 32], strides = [1, 1]} : vector<16x96xf32> to vector<16x32xf32>
    %23 = vector.extract_strided_slice %18 {offsets = [0, 64], sizes = [16, 32], strides = [1, 1]} : vector<16x96xf32> to vector<16x32xf32>
    %cst_21 = arith.constant dense<0.000000e+00> : vector<64x32xf32>
    %24 = tpu.matmul %4, %22, %cst_21 {dimension_numbers = #tpu.dot_dimension_numbers<[1], [0], [0], [1], [0, 0, 1, 1], [], []>} : vector<64x16xf32>, vector<16x32xf32>, vector<64x32xf32> -> vector<64x32xf32>
    %25 = arith.mulf %24, %5 : vector<64x32xf32>
    %cst_22 = arith.constant dense<0.000000e+00> : vector<64x32xf32>
    %26 = tpu.matmul %4, %23, %cst_22 {dimension_numbers = #tpu.dot_dimension_numbers<[1], [0], [0], [1], [0, 0, 1, 1], [], []>} : vector<64x16xf32>, vector<16x32xf32>, vector<64x32xf32> -> vector<64x32xf32>
    %27 = arith.mulf %26, %5 : vector<64x32xf32>
    %cst_23 = arith.constant dense<0.000000e+00> : vector<16x64xf32>
    %28 = tpu.matmul %21, %25, %cst_23 {dimension_numbers = #tpu.dot_dimension_numbers<[1], [1], [0], [0], [0, 0, 1, 0], [], []>} : vector<16x32xf32>, vector<64x32xf32>, vector<16x64xf32> -> vector<16x64xf32>
    %29 = arith.addf %28, %6 : vector<16x64xf32>
    %cst_24 = arith.constant dense<0xFF800000> : vector<16xf32>
    %30 = vector.multi_reduction <maximumf>, %29, %cst_24 [1] : vector<16x64xf32> to vector<16xf32>
    %31 = vector.shape_cast %30 : vector<16xf32> to vector<16x1xf32>
    %32 = vector.broadcast %31 : vector<16x1xf32> to vector<16x64xf32>
    %33 = arith.subf %29, %32 : vector<16x64xf32>
    %34 = math.exp %33 : vector<16x64xf32>
    %cst_25 = arith.constant dense<0.000000e+00> : vector<16x32xf32>
    %35 = tpu.matmul %34, %5, %cst_25 {dimension_numbers = #tpu.dot_dimension_numbers<[1], [0], [0], [1], [0, 0, 1, 1], [], []>} : vector<16x64xf32>, vector<64x32xf32>, vector<16x32xf32> -> vector<16x32xf32>
    %cst_26 = arith.constant dense<0.000000e+00> : vector<16x32xf32>
    %36 = tpu.matmul %34, %27, %cst_26 {dimension_numbers = #tpu.dot_dimension_numbers<[1], [0], [0], [1], [0, 0, 1, 1], [], []>} : vector<16x64xf32>, vector<64x32xf32>, vector<16x32xf32> -> vector<16x32xf32>
    %37 = arith.divf %36, %35 : vector<16x32xf32>
    %cst_27 = arith.constant dense<0.000000e+00> : vector<16x32xf32>
    %38 = tpu.matmul %37, %2, %cst_27 {dimension_numbers = #tpu.dot_dimension_numbers<[1], [0], [0], [1], [0, 0, 1, 1], [], []>} : vector<16x32xf32>, vector<32x32xf32>, vector<16x32xf32> -> vector<16x32xf32>
    %39 = vector.broadcast %10 : vector<1x32xf32> to vector<16x32xf32>
    %40 = arith.addf %38, %39 : vector<16x32xf32>
    %41 = arith.addf %0, %40 : vector<16x32xf32>
    %cst_28 = arith.constant dense<0.000000e+00> : vector<16xf32>
    %42 = vector.multi_reduction <add>, %41, %cst_28 [1] : vector<16x32xf32> to vector<16xf32>
    %43 = vector.shape_cast %42 : vector<16xf32> to vector<16x1xf32>
    %cst_29 = arith.constant 3.200000e+01 : f32
    %44 = vector.broadcast %cst_29 : f32 to vector<16x1xf32>
    %45 = arith.divf %43, %44 : vector<16x1xf32>
    %46 = vector.broadcast %45 : vector<16x1xf32> to vector<16x32xf32>
    %47 = arith.subf %41, %46 : vector<16x32xf32>
    %48 = arith.mulf %47, %47 : vector<16x32xf32>
    %cst_30 = arith.constant dense<0.000000e+00> : vector<16xf32>
    %49 = vector.multi_reduction <add>, %48, %cst_30 [1] : vector<16x32xf32> to vector<16xf32>
    %50 = vector.shape_cast %49 : vector<16xf32> to vector<16x1xf32>
    %cst_31 = arith.constant 3.200000e+01 : f32
    %51 = vector.broadcast %cst_31 : f32 to vector<16x1xf32>
    %52 = arith.divf %50, %51 : vector<16x1xf32>
    %cst_32 = arith.constant 9.99999974E-6 : f32
    %53 = vector.broadcast %cst_32 : f32 to vector<16x1xf32>
    %54 = arith.addf %52, %53 : vector<16x1xf32>
    %55 = math.rsqrt %54 : vector<16x1xf32>
    %56 = vector.broadcast %55 : vector<16x1xf32> to vector<16x32xf32>
    %57 = arith.mulf %47, %56 : vector<16x32xf32>
    %58 = vector.broadcast %12 : vector<1x32xf32> to vector<16x32xf32>
    %59 = arith.mulf %57, %58 : vector<16x32xf32>
    %60 = vector.broadcast %13 : vector<1x32xf32> to vector<16x32xf32>
    %61 = arith.addf %59, %60 : vector<16x32xf32>
    %cst_33 = arith.constant dense<0.000000e+00> : vector<16x64xf32>
    %62 = tpu.matmul %61, %3, %cst_33 {dimension_numbers = #tpu.dot_dimension_numbers<[1], [0], [0], [1], [0, 0, 1, 1], [], []>} : vector<16x32xf32>, vector<32x64xf32>, vector<16x64xf32> -> vector<16x64xf32>
    %63 = vector.broadcast %9 : vector<1x64xf32> to vector<16x64xf32>
    %64 = arith.addf %62, %63 : vector<16x64xf32>
    %cst_34 = arith.constant 5.000000e-01 : f32
    %65 = vector.broadcast %cst_34 : f32 to vector<16x64xf32>
    %66 = arith.mulf %65, %64 : vector<16x64xf32>
    %cst_35 = arith.constant 0.707106769 : f32
    %67 = vector.broadcast %cst_35 : f32 to vector<16x64xf32>
    %68 = arith.mulf %64, %67 : vector<16x64xf32>
    %69 = math.erf %68 : vector<16x64xf32>
    %cst_36 = arith.constant 1.000000e+00 : f32
    %70 = vector.broadcast %cst_36 : f32 to vector<16x64xf32>
    %71 = arith.addf %70, %69 : vector<16x64xf32>
    %72 = arith.mulf %66, %71 : vector<16x64xf32>
    %cst_37 = arith.constant dense<0.000000e+00> : vector<16x32xf32>
    %73 = tpu.matmul %72, %7, %cst_37 {dimension_numbers = #tpu.dot_dimension_numbers<[1], [0], [0], [1], [0, 0, 1, 1], [], []>} : vector<16x64xf32>, vector<64x32xf32>, vector<16x32xf32> -> vector<16x32xf32>
    %74 = vector.broadcast %11 : vector<1x32xf32> to vector<16x32xf32>
    %75 = arith.addf %73, %74 : vector<16x32xf32>
    %76 = arith.addf %61, %75 : vector<16x32xf32>
    %cst_38 = arith.constant dense<0.000000e+00> : vector<16xf32>
    %77 = vector.multi_reduction <add>, %76, %cst_38 [1] : vector<16x32xf32> to vector<16xf32>
    %78 = vector.shape_cast %77 : vector<16xf32> to vector<16x1xf32>
    %cst_39 = arith.constant 3.200000e+01 : f32
    %79 = vector.broadcast %cst_39 : f32 to vector<16x1xf32>
    %80 = arith.divf %78, %79 : vector<16x1xf32>
    %81 = vector.broadcast %80 : vector<16x1xf32> to vector<16x32xf32>
    %82 = arith.subf %76, %81 : vector<16x32xf32>
    %83 = arith.mulf %82, %82 : vector<16x32xf32>
    %cst_40 = arith.constant dense<0.000000e+00> : vector<16xf32>
    %84 = vector.multi_reduction <add>, %83, %cst_40 [1] : vector<16x32xf32> to vector<16xf32>
    %85 = vector.shape_cast %84 : vector<16xf32> to vector<16x1xf32>
    %cst_41 = arith.constant 3.200000e+01 : f32
    %86 = vector.broadcast %cst_41 : f32 to vector<16x1xf32>
    %87 = arith.divf %85, %86 : vector<16x1xf32>
    %cst_42 = arith.constant 9.99999974E-6 : f32
    %88 = vector.broadcast %cst_42 : f32 to vector<16x1xf32>
    %89 = arith.addf %87, %88 : vector<16x1xf32>
    %90 = math.rsqrt %89 : vector<16x1xf32>
    %91 = vector.broadcast %90 : vector<16x1xf32> to vector<16x32xf32>
    %92 = arith.mulf %82, %91 : vector<16x32xf32>
    %93 = vector.broadcast %14 : vector<1x32xf32> to vector<16x32xf32>
    %94 = arith.mulf %92, %93 : vector<16x32xf32>
    %95 = vector.broadcast %15 : vector<1x32xf32> to vector<16x32xf32>
    %96 = arith.addf %94, %95 : vector<16x32xf32>
    %c0_43 = arith.constant 0 : index
    %c0_44 = arith.constant 0 : index
    %97 = vector.load %arg4[%c0_43, %c0_44] : memref<16x32xf32, #tpu.memory_space<vmem>>, vector<16x32xf32>
    tpu.vector_store %arg4[%c0_43, %c0_44], %96 {strides = array<i32>} : memref<16x32xf32, #tpu.memory_space<vmem>>, vector<16x32xf32>,
    return
  }
}

</mosaic_0001>

<bundles_post_ra>
// kernel: tpu_custom_call.1
= control target key start
LH: loop header
LB: loop body
LE: loop exit
PB: predicated region body
PF: predicated region fallthrough
CT: control target
= control target key end

     0   :  { %vm70_vm0 = vcmask 261120   ;;  %s1669_s0 = inlined_call_operand.vmem [shape: f32[16,32], index: 0, kind: input, shape index: {}]   ;;  %s1670_s1 = inlined_call_operand.vmem [shape: f32[96,96], index: 1, kind: input, shape index: {}]   ;;  %s1671_s2 = inlined_call_operand.vmem [shape: f32[208,64], index: 2, kind: input, shape index: {}]   ;;  %s1672_s3 = inlined_call_operand.vmem [shape: f32[8,96], index: 3, kind: input, shape index: {}]   ;;  %s1673_s4 = inlined_call_operand.hbm [shape: f32[16,32], index: 4, kind: output, shape index: {}]  }
   0x1   :  { %v23_v0 = vld [vmem:[%s1670_s1 + $0x18] sm:$0xff]  ;;  %v22_v1 = vld [vmem:[%s1670_s1 + $0x10] sm:$0xff]  ;;  %v1412_v2 = vld [vmem:[%s1669_s0] sm:$0xff] }
   0x2   :  { %1185 = vmatprep.subr.mxu0 %v23_v0  ;;  %v21_v3 = vld [vmem:[%s1670_s1 + $0x8] sm:$0xff]  ;;  %1193 = vmatprep.mubr.msk.f32.mxu0 %vm70_vm0, %v1412_v2 }
   0x3   :  { %1186 = vmatpush3.msra.mxu0 %v23_v0 }
   0x4   :  { %9 = vsyncpa [#allocation3], 0  ;;  %1187 = vmatprep.subr.mxu0 %v22_v1  ;;  %v20_v4 = vld [vmem:[%s1670_s1] sm:$0xff]  ;;  %v1425_v5 = vld [vmem:[%s1669_s0 + $0x8] sm:$0xff]  ;;  %vm162_vm1 = vcmask 130048   ;;  %s1373_s0 = smov 64  }
   0x5   :  { %1188 = vmatpush3.msra.mxu0 %v22_v1  ;;  %v32_v6 = vld [vmem:[%s1671_s2] sm:$0xff]  ;;  %s1374_s5 = smov 96   ;;  %v33_v16 = vld [vmem:[%s1671_s2 + $0x8] sm:$0xff]  ;;  %v34_v17 = vld [vmem:[%s1671_s2 + $0x10] sm:$0xff]  ;;  %vm524_vm2 = vcmask 523264   ;;  %s1375_s30 = smov [#allocation2]  }
   0x6   :  { %1189 = vmatprep.subr.mxu0 %v21_v3  ;;  %1200 = vmatprep.mubr.msk.f32.mxu1 %vm162_vm1, %v32_v6  ;;  %v1061_v7 = vld [vmem:[%s1672_s3] ss:$0 sm:$0xff]  ;;  %v35_v18 = vld [vmem:[%s1671_s2 + $0x18] sm:$0xff]  ;;  %v37_v20 = vld [vmem:[%s1671_s2 + $0x28] sm:$0xff] }
   0x7   :  { %1190 = vmatpush3.msra.mxu0 %v21_v3  ;;  %v36_v19 = vld [vmem:[%s1671_s2 + $0x20] sm:$0xff]  ;;  %v38_v21 = vld [vmem:[%s1671_s2 + $0x30] sm:$0xff]  ;;  %v39_v22 = vld [vmem:[%s1671_s2 + $0x38] sm:$0xff] }
   0x8   :  { %1191 = vmatprep.subr.mxu0 %v20_v4  ;;  %v1480_v24 = vld [vmem:[%s1671_s2 + $0x78] sm:$0xff]  ;;  %v1486_v25 = vld [vmem:[%s1671_s2 + $0x70] sm:$0xff]  ;;  %v1493_v26 = vld [vmem:[%s1671_s2 + $0x68] sm:$0xff] }
   0x9   :  { %1192 = vmatpush3.msra.mxu0 %v20_v4  ;;  %v1500_v27 = vld [vmem:[%s1671_s2 + $0x60] sm:$0xff]  ;;  %v1507_v28 = vld [vmem:[%s1671_s2 + $0x58] sm:$0xff]  ;;  %v1514_v29 = vld [vmem:[%s1671_s2 + $0x50] sm:$0xff] }
   0xa   :  { %1194 = vmatmul.mubr.msk.f32.vlgmr.msra.gmra.mxu0 %vm70_vm0, %v1425_v5  ;;  %v1521_v30 = vld [vmem:[%s1671_s2 + $0x48] sm:$0xff]  ;;  %v1528_v31 = vld [vmem:[%s1671_s2 + $0x40] sm:$0xff] }
   0xb   :  { %1216 = vmatprep.mubr.msk.f32.mxu0 %vm162_vm1, %v32_v6  ;;  %v49_v49 = vld [vmem:[%s1671_s2 + $0x88] sm:$0xff]  ;;  %v48_v51 = vld [vmem:[%s1671_s2 + $0x80] sm:$0xff] }
  0xca   :  { %v1195_v8 = vpop.f32.mrf.mxu0 }
  0xcb   :  { %v1437_v9 = vadd.f32 %v1195_v8, %v1061_v7 }
  0xcc   :  { %v143_v10 = vpop.f32.mrf.mxu0 }
  0xcd   :  { %302 = vrot.lane.b32.xlu1 %v1437_v9, %s1373_s0  ;;  %158 = vrot.lane.b32.xlu0 %v1437_v9, %s1374_s5  ;;  %v144_v11 = vadd.f32 %v1061_v7, %v143_v10  ;;  %v153_v48 = vmul.f32 0.35355338, %v1437_v9 }
  0xcf   :  { %v152_v23 = vmul.f32 0.35355338, %v144_v11 }
  0xd1   :  { %300 = vrot.lane.b32.xlu1 %v144_v11, %s1373_s0  ;;  %156 = vrot.lane.b32.xlu0 %v144_v11, %s1374_s5  ;;  %s1050_s0 = sshll.u32 %s1375_s30, 4  ;;  %s1051_s0 = int_to_ptr.vmem [resolvable:$true] %s1050_s0 }
  0xd2   :  { %s1351_s5 = scalar_lea.vmem %s1051_s0, 256  ;;  %p1356_p1 = scmp.lt.s32.totalorder %s1051_s0, %s1051_s0 }
  0xd3   :  { %p1352_p0 = scmp.ne.s32.totalorder %s1051_s0, %s1351_s5  ;;  %p1357_p2 = scmp.lt.s32.totalorder %s1351_s5, %s1351_s5 }
  0xd5   :  { %p1358_p3 = por %p1357_p2, %p1356_p1 }
  0xd7   :  { %p1359_p4 = pnand %p1358_p3, %p1352_p0 }
 0x13f   :  { %v303_v12 = vpop.permute.xlu1 %302  ;;  %v159_v13 = vpop.permute.xlu0 %158 }
 0x140   :  { %1196 = vmatprep.subr.mxu1 %v159_v13  ;;  %1212 = vmatprep.subr.mxu0 %v303_v12 }
 0x141   :  { %1197 = vmatpush3.msra.mxu1 %v159_v13  ;;  %1213 = vmatpush3.msra.mxu0 %v303_v12 }
 0x143   :  { %v301_v14 = vpop.permute.xlu1 %300  ;;  %v157_v15 = vpop.permute.xlu0 %156 }
 0x144   :  { %1198 = vmatprep.subr.mxu1 %v157_v15  ;;  %1214 = vmatprep.subr.mxu0 %v301_v14 }
 0x145   :  { %1199 = vmatpush3.msra.mxu1 %v157_v15  ;;  %1215 = vmatpush3.msra.mxu0 %v301_v14 }
 0x146   :  { %1201 = vmatmul.mubr.msk.f32.vlgmr.msra.gmra.mxu1 %vm162_vm1, %v33_v16  ;;  %1217 = vmatmul.mubr.msk.f32.vlgmr.msra.gmra.mxu0 %vm162_vm1, %v33_v16 }
 0x147   :  { %1203 = vmatprep.mubr.msk.f32.mxu1 %vm162_vm1, %v34_v17  ;;  %1219 = vmatprep.mubr.msk.f32.mxu0 %vm162_vm1, %v34_v17 }
 0x148   :  { %1247 = vmatprep.subr.mxu0 %v1480_v24 }
 0x149   :  { %1248 = vmatpush3.msra.mxu0 %v1480_v24 }
 0x14a   :  { %1204 = vmatmul.mubr.msk.f32.gmra.mxu1 %vm162_vm1, %v35_v18  ;;  %1220 = vmatmul.mubr.msk.f32.gmra.mxu0 %vm162_vm1, %v35_v18 }
 0x14b   :  { %1206 = vmatprep.mubr.msk.f32.mxu1 %vm162_vm1, %v36_v19  ;;  %1222 = vmatprep.mubr.msk.f32.mxu0 %vm162_vm1, %v36_v19  ;;  %v27_v19 = vld [vmem:[%s1670_s1 + $0x38] sm:$0xff] }
 0x14c   :  { %1249 = vmatprep.subr.mxu0 %v1486_v25 }
 0x14d   :  { %1250 = vmatpush3.msra.mxu0 %v1486_v25 }
 0x14e   :  { %1207 = vmatmul.mubr.msk.f32.gmra.mxu1 %vm162_vm1, %v37_v20  ;;  %1223 = vmatmul.mubr.msk.f32.gmra.mxu0 %vm162_vm1, %v37_v20  ;;  %v26_v20 = vld [vmem:[%s1670_s1 + $0x30] sm:$0xff] }
 0x14f   :  { %1209 = vmatprep.mubr.msk.f32.mxu1 %vm162_vm1, %v38_v21  ;;  %1225 = vmatprep.mubr.msk.f32.mxu0 %vm162_vm1, %v38_v21  ;;  %v25_v21 = vld [vmem:[%s1670_s1 + $0x28] sm:$0xff] }
 0x150   :  { %1251 = vmatprep.subr.mxu0 %v1493_v26 }
 0x151   :  { %1252 = vmatpush3.msra.mxu0 %v1493_v26 }
 0x152   :  { %1210 = vmatmul.mubr.msk.f32.gmra.mxu1 %vm162_vm1, %v39_v22  ;;  %1226 = vmatmul.mubr.msk.f32.gmra.mxu0 %vm162_vm1, %v39_v22  ;;  %v24_v22 = vld [vmem:[%s1670_s1 + $0x20] sm:$0xff] }
 0x153   :  { %1244 = vmatprep.mubr.msk.f32.mxu1 %vm70_vm0, %v152_v23  ;;  %1253 = vmatprep.subr.mxu0 %v1500_v27 }
 0x154   :  { %1254 = vmatpush3.msra.mxu0 %v1500_v27 }
 0x155   :  { %1255 = vmatprep.subr.mxu0 %v1507_v28 }
 0x156   :  { %1256 = vmatpush3.msra.mxu0 %v1507_v28 }
 0x157   :  { %1257 = vmatprep.subr.mxu0 %v1514_v29 }
 0x158   :  { %1258 = vmatpush3.msra.mxu0 %v1514_v29 }
 0x159   :  { %1259 = vmatprep.subr.mxu0 %v1521_v30 }
 0x15a   :  { %1260 = vmatpush3.msra.mxu0 %v1521_v30 }
 0x15b   :  { %1261 = vmatprep.subr.mxu0 %v1528_v31 }
 0x15c   :  { %1262 = vmatpush3.msra.mxu0 %v1528_v31 }
 0x206   :  { %v1202_v32 = vpop.f32.mrf.mxu1  ;;  %v1218_v57 = vpop.f32.mrf.mxu0 }
 0x207   :  { %v293_v46 = vmul.f32 %v1202_v32, %v1521_v30  ;;  %v412_v17 = vmul.f32 %v1218_v57, %v1521_v30  ;;  %v1094_v32 = vld [vmem:[%s1672_s3 + $0x2] ss:$0 sm:$0xff] }
 0x208   :  { %v253_v33 = vpop.f32.mrf.mxu1  ;;  %v372_v58 = vpop.f32.mrf.mxu0 }
 0x209   :  { %v292_v47 = vmul.f32 %v253_v33, %v1528_v31  ;;  %v411_v18 = vmul.f32 %v372_v58, %v1528_v31 }
 0x20a   :  { %v1205_v34 = vpop.f32.mrf.mxu1  ;;  %v1221_v59 = vpop.f32.mrf.mxu0 }
 0x20b   :  { %v295_v44 = vmul.f32 %v1205_v34, %v1507_v28  ;;  %v414_v15 = vmul.f32 %v1221_v59, %v1507_v28  ;;  %v1097_v59 = vld [vmem:[%s1672_s3 + $0x4] ss:$0 sm:$0xff] }
 0x20c   :  { %v263_v35 = vpop.f32.mrf.mxu1  ;;  %v382_v60 = vpop.f32.mrf.mxu0 }
 0x20d   :  { %v294_v45 = vmul.f32 %v263_v35, %v1514_v29  ;;  %v413_v16 = vmul.f32 %v382_v60, %v1514_v29 }
 0x20e   :  { %v1208_v36 = vpop.f32.mrf.mxu1  ;;  %v1224_v61 = vpop.f32.mrf.mxu0 }
 0x20f   :  { %v297_v42 = vmul.f32 %v1208_v36, %v1493_v26  ;;  %v416_v13 = vmul.f32 %v1224_v61, %v1493_v26  ;;  %v1098_v61 = vld [vmem:[%s1672_s3 + $0x5] ss:$0 sm:$0xff] }
 0x210   :  { %v273_v37 = vpop.f32.mrf.mxu1  ;;  %v392_v62 = vpop.f32.mrf.mxu0 }
 0x211   :  { %v296_v43 = vmul.f32 %v273_v37, %v1500_v27  ;;  %v415_v14 = vmul.f32 %v392_v62, %v1500_v27 }
 0x212   :  { %v1211_v38 = vpop.f32.mrf.mxu1  ;;  %v1227_v63 = vpop.f32.mrf.mxu0 }
 0x213   :  { %v299_v39 = vmul.f32 %v1211_v38, %v1480_v24  ;;  %v418_v0 = vmul.f32 %v1227_v63, %v1480_v24 }
 0x214   :  { %v283_v40 = vpop.f32.mrf.mxu1  ;;  %v402_v9 = vpop.f32.mrf.mxu0 }
 0x215   :  { %v298_v41 = vmul.f32 %v283_v40, %v1486_v25  ;;  %1228 = vmatprep.subr.msk.mxu1 %vm70_vm0, %v299_v39  ;;  %1266 = vmatprep.subr.mxu0 %v418_v0  ;;  %v417_v12 = vmul.f32 %v402_v9, %v1486_v25  ;;  %v54_v9 = vld [vmem:[%s1671_s2 + $0xb0] sm:$0xff] }
 0x216   :  { %1229 = vmatpush3.xpose.msk.msra.mxu1 %vm70_vm0, %v299_v39 }
 0x217   :  { %1230 = vmatprep.subr.msk.mxu1 %vm70_vm0, %v298_v41 }
 0x21a   :  { %1231 = vmatpush3.xpose.msk.msra.mxu1 %vm70_vm0, %v298_v41 }
 0x21b   :  { %1232 = vmatprep.subr.msk.mxu1 %vm70_vm0, %v297_v42 }
 0x21e   :  { %1233 = vmatpush3.xpose.msk.msra.mxu1 %vm70_vm0, %v297_v42 }
 0x21f   :  { %1234 = vmatprep.subr.msk.mxu1 %vm70_vm0, %v296_v43 }
 0x222   :  { %1235 = vmatpush3.xpose.msk.msra.mxu1 %vm70_vm0, %v296_v43 }
 0x223   :  { %1236 = vmatprep.subr.msk.mxu1 %vm70_vm0, %v295_v44 }
 0x226   :  { %1237 = vmatpush3.xpose.msk.msra.mxu1 %vm70_vm0, %v295_v44 }
 0x227   :  { %1238 = vmatprep.subr.msk.mxu1 %vm70_vm0, %v294_v45 }
 0x22a   :  { %1239 = vmatpush3.xpose.msk.msra.mxu1 %vm70_vm0, %v294_v45 }
 0x22b   :  { %1240 = vmatprep.subr.msk.mxu1 %vm70_vm0, %v293_v46 }
 0x22e   :  { %1241 = vmatpush3.xpose.msk.msra.mxu1 %vm70_vm0, %v293_v46 }
 0x22f   :  { %1242 = vmatprep.subr.msk.mxu1 %vm70_vm0, %v292_v47 }
 0x232   :  { %1243 = vmatpush3.xpose.msk.msra.mxu1 %vm70_vm0, %v292_v47 }
 0x233   :  { %1285 = vmatprep.subr.mxu1 %v27_v19 }
 0x235   :  { %1245 = vmatmul.mubr.msk.f32.vlgmr.msra.gmra.mxu1 %vm70_vm0, %v153_v48 }
 0x236   :  { %1286 = vmatpush3.msra.mxu1 %v27_v19 }
 0x237   :  { %1287 = vmatprep.subr.mxu1 %v26_v20 }
 0x238   :  { %1288 = vmatpush3.msra.mxu1 %v26_v20 }
 0x239   :  { %1289 = vmatprep.subr.mxu1 %v25_v21 }
 0x23a   :  { %1290 = vmatpush3.msra.mxu1 %v25_v21 }
 0x23b   :  { %1291 = vmatprep.subr.mxu1 %v24_v22 }
 0x23c   :  { %1292 = vmatpush3.msra.mxu1 %v24_v22 }
 0x2f5   :  { %v1246_v50 = vpop.f32.mrf.mxu1 }
 0x2f6   :  { %v521_v52 = vadd.f32 %v1246_v50, %v49_v49  ;;  %v30_v49 = vld [vmem:[%s1670_s1 + $0x50] sm:$0xff]  ;;  %v29_v50 = vld [vmem:[%s1670_s1 + $0x48] sm:$0xff] }
 0x2f7   :  { %v515_v53 = vpop.f32.mrf.mxu1 }
 0x2f8   :  { %v516_v54 = vadd.f32 %v515_v53, %v48_v51  ;;  %v528_v55 = vsel %vm524_vm2, %v521_v52, -inf  ;;  %v28_v51 = vld [vmem:[%s1670_s1 + $0x40] sm:$0xff] }
 0x2f9   :  { %529 = vmax.xlane.f32.xlu1 %v528_v55 }
 0x2fa   :  { %v525_v56 = vsel %vm524_vm2, %v516_v54, -inf }
 0x2fb   :  { %526 = vmax.xlane.f32.xlu0 %v525_v56 }
 0x382   :  { %v530_v1 = vpop.xlane.xlu1 %529 }
 0x383   :  { %v532_v3 = vsub.f32 %v521_v52, %v530_v1 }
 0x384   :  { %v527_v4 = vpop.xlane.xlu0 %526 }
 0x385   :  { %v531_v6 = vsub.f32 %v516_v54, %v527_v4  ;;  %v535_v7 = vmul.f32 1.442695, %v532_v3 }
 0x387   :  { %v533_v8 = vmul.f32 1.442695, %v531_v6  ;;  %v57_v6 = vld [vmem:[%s1671_s2 + $0xc8] sm:$0xff] }
 0x388   :  { %1307 = vmatprep.subr.mxu1 %v57_v6 }
 0x389   :  { %1331 = vpow2.f32 %v533_v8  ;;  %v55_v8 = vld [vmem:[%s1671_s2 + $0xb8] sm:$0xff] }
 0x38a   :  { %1333 = vpow2.f32 %v535_v7  ;;  %v56_v7 = vld [vmem:[%s1671_s2 + $0xc0] sm:$0xff] }
 0x396   :  { %v1332_v10 = vpop.eup %1331 }
 0x397   :  { %v1334_v11 = vpop.eup %1333  ;;  %1263 = vmatprep.mubr.msk.f32.mxu0 %vm524_vm2, %v1332_v10 }
 0x398   :  { %1264 = vmatmul.mubr.msk.f32.vlgmr.msra.gmra.mxu0 %vm524_vm2, %v1334_v11 }
 0x399   :  { %1267 = vmatpush3.msra.mxu0 %v418_v0  ;;  %1282 = vmatprep.mubr.msk.f32.mxu0 %vm524_vm2, %v1332_v10  ;;  %v53_v10 = vld [vmem:[%s1671_s2 + $0xa8] sm:$0xff] }
 0x39a   :  { %1268 = vmatprep.subr.mxu0 %v417_v12 }
 0x39b   :  { %1269 = vmatpush3.msra.mxu0 %v417_v12  ;;  %v51_v12 = vld [vmem:[%s1671_s2 + $0x98] sm:$0xff] }
 0x39c   :  { %1270 = vmatprep.subr.mxu0 %v416_v13 }
 0x39d   :  { %1271 = vmatpush3.msra.mxu0 %v416_v13  ;;  %v50_v13 = vld [vmem:[%s1671_s2 + $0x90] sm:$0xff] }
 0x39e   :  { %1272 = vmatprep.subr.mxu0 %v415_v14 }
 0x39f   :  { %1273 = vmatpush3.msra.mxu0 %v415_v14  ;;  %v1099_v14 = vld [vmem:[%s1672_s3 + $0x1] ss:$0 sm:$0xff] }
 0x3a0   :  { %1274 = vmatprep.subr.mxu0 %v414_v15 }
 0x3a1   :  { %1275 = vmatpush3.msra.mxu0 %v414_v15 }
 0x3a2   :  { %1276 = vmatprep.subr.mxu0 %v413_v16 }
 0x3a3   :  { %1277 = vmatpush3.msra.mxu0 %v413_v16 }
 0x3a4   :  { %1278 = vmatprep.subr.mxu0 %v412_v17 }
 0x3a5   :  { %1279 = vmatpush3.msra.mxu0 %v412_v17 }
 0x3a6   :  { %1280 = vmatprep.subr.mxu0 %v411_v18 }
 0x3a7   :  { %1281 = vmatpush3.msra.mxu0 %v411_v18 }
 0x3a8   :  { %1283 = vmatmul.mubr.msk.f32.vlgmr.msra.gmra.mxu0 %vm524_vm2, %v1334_v11  ;;  %v52_v11 = vld [vmem:[%s1671_s2 + $0xa0] sm:$0xff] }
 0x458   :  { %v1265_v23 = vpop.f32.mrf.mxu0 }
 0x45a   :  { %v609_v24 = vpop.f32.mrf.mxu0 }
 0x45b   :  { %1335 = vrcp.f32 %v609_v24 }
 0x45c   :  { %1337 = vrcp.f32 %v1265_v23 }
 0x468   :  { %v1336_v25 = vpop.eup %1335  ;;  %v1284_v26 = vpop.f32.mrf.mxu0 }
 0x469   :  { %v1338_v27 = vpop.eup %1337 }
 0x46a   :  { %v684_v28 = vpop.f32.mrf.mxu0  ;;  %v696_v30 = vmul.f32 %v1338_v27, %v1284_v26 }
 0x46b   :  { %v694_v29 = vmul.f32 %v1336_v25, %v684_v28 }
 0x46d   :  { %1293 = vmatprep.mubr.msk.f32.mxu1 %vm70_vm0, %v694_v29  ;;  %v1102_v29 = vld [vmem:[%s1672_s3 + $0x3] ss:$0 sm:$0xff] }
 0x46e   :  { %1294 = vmatmul.mubr.msk.f32.vlgmr.msra.gmra.mxu1 %vm70_vm0, %v696_v30 }
 0x46f   :  { %1308 = vmatpush3.msra.mxu1 %v57_v6 }
 0x470   :  { %1309 = vmatprep.subr.mxu1 %v56_v7 }
 0x471   :  { %1310 = vmatpush3.msra.mxu1 %v56_v7 }
 0x472   :  { %1311 = vmatprep.subr.mxu1 %v55_v8 }
 0x473   :  { %1312 = vmatpush3.msra.mxu1 %v55_v8 }
 0x474   :  { %1313 = vmatprep.subr.mxu1 %v54_v9 }
 0x475   :  { %1314 = vmatpush3.msra.mxu1 %v54_v9 }
 0x476   :  { %1315 = vmatprep.subr.mxu1 %v53_v10 }
 0x477   :  { %1316 = vmatpush3.msra.mxu1 %v53_v10 }
 0x478   :  { %1317 = vmatprep.subr.mxu1 %v52_v11 }
 0x479   :  { %1318 = vmatpush3.msra.mxu1 %v52_v11 }
 0x47a   :  { %1319 = vmatprep.subr.mxu1 %v51_v12 }
 0x47b   :  { %1320 = vmatpush3.msra.mxu1 %v51_v12 }
 0x47c   :  { %1321 = vmatprep.subr.mxu1 %v50_v13 }
 0x47d   :  { %1322 = vmatpush3.msra.mxu1 %v50_v13 }
 0x52e   :  { %v1295_v31 = vpop.f32.mrf.mxu1 }
 0x52f   :  { %v779_v34 = vadd.f32 %v1295_v31, %v1094_v32 }
 0x530   :  { %v773_v33 = vpop.f32.mrf.mxu1 }
 0x531   :  { %v774_v35 = vadd.f32 %v1094_v32, %v773_v33  ;;  %v783_v38 = vadd.f32 %v779_v34, %v1425_v5  ;;  %v31_v5 = vld [vmem:[%s1670_s1 + $0x58] sm:$0xff] }
 0x532   :  { %1296 = vmatprep.subr.mxu0 %v31_v5 }
 0x533   :  { %v782_v36 = vadd.f32 %v774_v35, %v1412_v2  ;;  %v787_v39 = vsel %vm70_vm0, %v783_v38, 0.0  ;;  %1297 = vmatpush3.msra.mxu0 %v31_v5 }
 0x534   :  { %1298 = vmatprep.subr.mxu0 %v30_v49 }
 0x535   :  { %v784_v37 = vsel %vm70_vm0, %v782_v36, 0.0  ;;  %1299 = vmatpush3.msra.mxu0 %v30_v49 }
 0x536   :  { %785 = vadd.xlane.f32.xlu0 %v784_v37  ;;  %1300 = vmatprep.subr.mxu0 %v29_v50 }
 0x537   :  { %1301 = vmatpush3.msra.mxu0 %v29_v50 }
 0x538   :  { %1302 = vmatprep.subr.mxu0 %v28_v51 }
 0x539   :  { %1303 = vmatpush3.msra.mxu0 %v28_v51 }
 0x53a   :  { %788 = vadd.xlane.f32.xlu0 %v787_v39 }
 0x5bf   :  { %v786_v40 = vpop.xlane.xlu0 %785 }
 0x5c0   :  { %v791_v41 = vmul.f32 0.03125, %v786_v40 }
 0x5c2   :  { %v793_v42 = vsub.f32 %v782_v36, %v791_v41 }
 0x5c3   :  { %v789_v43 = vpop.xlane.xlu0 %788 }
 0x5c4   :  { %v792_v44 = vmul.f32 0.03125, %v789_v43  ;;  %v795_v45 = vmul.f32 %v793_v42, %v793_v42 }
 0x5c6   :  { %v794_v46 = vsub.f32 %v783_v38, %v792_v44  ;;  %v797_v47 = vsel %vm70_vm0, %v795_v45, 0.0 }
 0x5c7   :  { %798 = vadd.xlane.f32.xlu1 %v797_v47 }
 0x5c8   :  { %v796_v48 = vmul.f32 %v794_v46, %v794_v46 }
 0x5ca   :  { %v800_v2 = vsel %vm70_vm0, %v796_v48, 0.0 }
 0x5cb   :  { %801 = vadd.xlane.f32.xlu0 %v800_v2 }
 0x650   :  { %v799_v52 = vpop.xlane.xlu1 %798 }
 0x651   :  { %v803_v53 = vmul.f32 0.03125, %v799_v52 }
 0x653   :  { %v805_v54 = vadd.f32 1e-05, %v803_v53  ;;  %v1105_v53 = vld [vmem:[%s1672_s3 + $0x6] ss:$0 sm:$0xff] }
 0x654   :  { %v802_v55 = vpop.xlane.xlu0 %801 }
 0x655   :  { %1339 = vrsqrt.f32 %v805_v54  ;;  %v804_v56 = vmul.f32 0.03125, %v802_v55 }
 0x657   :  { %v806_v57 = vadd.f32 1e-05, %v804_v56  ;;  %v1106_v56 = vld [vmem:[%s1672_s3 + $0x7] ss:$0 sm:$0xff] }
 0x659   :  { %1341 = vrsqrt.f32 %v806_v57 }
 0x662   :  { %v1340_v58 = vpop.eup %1339 }
 0x663   :  { %v809_v60 = vmul.f32 %v1340_v58, %v793_v42 }
 0x665   :  { %v815_v62 = vmul.f32 %v1097_v59, %v809_v60 }
 0x666   :  { %v1342_v63 = vpop.eup %1341 }
 0x667   :  { %v810_v0 = vmul.f32 %v1342_v63, %v794_v46  ;;  %v821_v1 = vadd.f32 %v1098_v61, %v815_v62 }
 0x669   :  { %v816_v3 = vmul.f32 %v1097_v59, %v810_v0  ;;  %1304 = vmatprep.mubr.msk.f32.mxu0 %vm70_vm0, %v821_v1 }
 0x66b   :  { %v822_v4 = vadd.f32 %v1098_v61, %v816_v3 }
 0x66d   :  { %1305 = vmatmul.mubr.msk.f32.vlgmr.msra.gmra.mxu0 %vm70_vm0, %v822_v4 }
 0x72d   :  { %v1306_v15 = vpop.f32.mrf.mxu0 }
 0x72e   :  { %v905_v16 = vadd.f32 %v1306_v15, %v1099_v14 }
 0x72f   :  { %v899_v17 = vpop.f32.mrf.mxu0 }
 0x730   :  { %v911_v18 = vmul.f32 0.70710677, %v905_v16  ;;  %v900_v19 = vadd.f32 %v1099_v14, %v899_v17  ;;  %v909_v26 = vmul.f32 0.5, %v905_v16 }
 0x732   :  { %1343 = verf.f32 %v911_v18  ;;  %v910_v20 = vmul.f32 0.70710677, %v900_v19  ;;  %v908_v24 = vmul.f32 0.5, %v900_v19 }
 0x734   :  { %1345 = verf.f32 %v910_v20 }
 0x73f   :  { %v1344_v21 = vpop.eup %1343 }
 0x740   :  { %v915_v23 = vadd.f32 1.0, %v1344_v21 }
 0x741   :  { %v1346_v22 = vpop.eup %1345 }
 0x742   :  { %v914_v25 = vadd.f32 1.0, %v1346_v22  ;;  %v917_v28 = vmul.f32 %v915_v23, %v909_v26 }
 0x744   :  { %v916_v27 = vmul.f32 %v914_v25, %v908_v24 }
 0x746   :  { %1323 = vmatprep.mubr.msk.f32.mxu1 %vm524_vm2, %v916_v27 }
 0x747   :  { %1324 = vmatmul.mubr.msk.f32.vlgmr.msra.gmra.mxu1 %vm524_vm2, %v917_v28 }
 0x807   :  { %v1325_v30 = vpop.f32.mrf.mxu1 }
 0x808   :  { %v1000_v31 = vadd.f32 %v1325_v30, %v1102_v29 }
 0x809   :  { %v994_v32 = vpop.f32.mrf.mxu1 }
 0x80a   :  { %v995_v33 = vadd.f32 %v1102_v29, %v994_v32  ;;  %v1004_v34 = vadd.f32 %v1000_v31, %v822_v4 }
 0x80c   :  { %v1008_v35 = vsel %vm70_vm0, %v1004_v34, 0.0  ;;  %v1003_v36 = vadd.f32 %v995_v33, %v821_v1 }
 0x80d   :  { %1009 = vadd.xlane.f32.xlu0 %v1008_v35 }
 0x80e   :  { %v1005_v37 = vsel %vm70_vm0, %v1003_v36, 0.0 }
 0x80f   :  { %1006 = vadd.xlane.f32.xlu1 %v1005_v37 }
 0x896   :  { %v1010_v38 = vpop.xlane.xlu0 %1009 }
 0x897   :  { %v1012_v39 = vmul.f32 0.03125, %v1010_v38 }
 0x898   :  { %v1007_v40 = vpop.xlane.xlu1 %1006 }
 0x899   :  { %v1014_v41 = vsub.f32 %v1004_v34, %v1012_v39  ;;  %v1011_v42 = vmul.f32 0.03125, %v1007_v40 }
 0x89b   :  { %v1013_v43 = vsub.f32 %v1003_v36, %v1011_v42  ;;  %v1016_v44 = vmul.f32 %v1014_v41, %v1014_v41 }
 0x89d   :  { %v1020_v45 = vsel %vm70_vm0, %v1016_v44, 0.0  ;;  %v1015_v46 = vmul.f32 %v1013_v43, %v1013_v43 }
 0x89e   :  { %1021 = vadd.xlane.f32.xlu0 %v1020_v45 }
 0x89f   :  { %v1017_v47 = vsel %vm70_vm0, %v1015_v46, 0.0 }
 0x8a0   :  { %1018 = vadd.xlane.f32.xlu1 %v1017_v47 }
 0x927   :  { %v1022_v48 = vpop.xlane.xlu0 %1021 }
 0x928   :  { %v1024_v2 = vmul.f32 0.03125, %v1022_v48 }
 0x929   :  { %v1019_v5 = vpop.xlane.xlu1 %1018 }
 0x92a   :  { %v1026_v49 = vadd.f32 1e-05, %v1024_v2  ;;  %v1023_v50 = vmul.f32 0.03125, %v1019_v5 }
 0x92c   :  { %1347 = vrsqrt.f32 %v1026_v49  ;;  %v1025_v51 = vadd.f32 1e-05, %v1023_v50 }
 0x92e   :  { %1349 = vrsqrt.f32 %v1025_v51 }
 0x939   :  { %v1348_v52 = vpop.eup %1347 }
 0x93a   :  { %v1030_v54 = vmul.f32 %v1348_v52, %v1014_v41 }
 0x93b   :  { %v1350_v55 = vpop.eup %1349 }
 0x93c   :  { %v1029_v57 = vmul.f32 %v1350_v55, %v1013_v43  ;;  %v1036_v58 = vmul.f32 %v1105_v53, %v1030_v54 }
 0x93e   :  { %v1035_v59 = vmul.f32 %v1105_v53, %v1029_v57  ;;  %v1042_v60 = vadd.f32 %v1106_v56, %v1036_v58 }
 0x940   :  { %v1041_v61 = vadd.f32 %v1106_v56, %v1035_v59  ;;  %1044 = vst.msk [vmem:[#allocation2 + $0x8] sm:$0xff] %vm70_vm0, %v1042_v60 }
 0x942   :  { %1043 = vst.msk [vmem:[#allocation2] sm:$0xff] %vm70_vm0, %v1041_v61 }
 0x943   :  { %1362 = shalt.err (!%p1359_p4)
}
 0x944   :  { %s1376_s3 = smov 128   ;;  %s1377_s6 = smov 8  }
 0x945   :  { %1056 = dma.vmem_to_hbm [thread:$0]  %s1051_s0, 256, %s1673_s4, [#allocation3], %s1376_s3, %s1376_s3, %s1377_s6  }
 0x946   :  { %1371 = dma.done.wait [#allocation3], 256  }
 0x947   :  { %1372 = vsyncadd [#allocation3], 4294967040 }
 0x948   :  { %1060 = vsyncpa [#allocation3], 1 }

</bundles_post_ra>
